<compile_context>
chip_gen: v7x
topology: tpu7x:2x2x1
jax: 0.10.0
libtpu: 0.0.40
codegen_flags: <defaults>
</compile_context>

<pallas_src>
import functools

import jax
import jax.numpy as jnp
from jax.experimental import pallas as pl
from jax.experimental.pallas import tpu as pltpu


def _round_up(x, m):
    return ((x + m - 1) // m) * m


# ----------------------------------------------------------------------------
# Kernel: fused actor+critic forward on one batch tile (batch on lanes).
# ----------------------------------------------------------------------------
def _actor_critic_kernel(obs_ref, w1_ref, b1_ref, w2_ref, b2_ref, w3_ref, b3_ref,
                         out_ref):
    x = obs_ref[...]                                             # [D, tb] bf16
    # layer 1: [F1p, D] @ [D, tb]  (actor | critic stacked on rows)
    h = jnp.dot(w1_ref[...], x, preferred_element_type=jnp.float32)
    h = jnp.tanh(h + b1_ref[...])                                # [F1p, tb] f32
    # layer 2: block-diagonal [F2p, F1p]
    h = jnp.dot(w2_ref[...], h.astype(w2_ref.dtype),
                preferred_element_type=jnp.float32)
    h = jnp.tanh(h + b2_ref[...])                                # [F2p, tb] f32
    # heads: [out_sub, F2p] (actor head rows + critic value row, zero-padded)
    out = jnp.dot(w3_ref[...], h.astype(w3_ref.dtype),
                  preferred_element_type=jnp.float32) + b3_ref[...]
    out_ref[...] = out.astype(out_ref.dtype)                     # [out_sub, tb]


# ----------------------------------------------------------------------------
# One-time weight repack: actor+critic -> fused / padded / transposed layout.
# ----------------------------------------------------------------------------
def pack_params(params, compute_dtype=jnp.bfloat16):
    """Repack actor/critic params into the fused kernel layout (do once)."""
    obs_dim, h1 = params["aw1"].shape
    h2 = params["aw2"].shape[1]
    action_dim = params["aw3"].shape[1]

    f1, f2 = 2 * h1, 2 * h2                    # logical fused widths
    f1p, f2p = _round_up(f1, 128), _round_up(f2, 128)   # lane-padded widths
    out_sub = _round_up(action_dim + 1, 8)     # sublane-padded head rows

    w1t = jnp.zeros((f1p, obs_dim), jnp.float32)
    w1t = w1t.at[:h1].set(params["aw1"].T).at[h1:f1].set(params["cw1"].T)
    b1 = jnp.zeros((f1p, 1), jnp.float32)
    b1 = b1.at[:h1].set(params["ab1"].T).at[h1:f1].set(params["cb1"].T)

    w2t = jnp.zeros((f2p, f1p), jnp.float32)
    w2t = w2t.at[:h2, :h1].set(params["aw2"].T)
    w2t = w2t.at[h2:f2, h1:f1].set(params["cw2"].T)
    b2 = jnp.zeros((f2p, 1), jnp.float32)
    b2 = b2.at[:h2].set(params["ab2"].T).at[h2:f2].set(params["cb2"].T)

    w3t = jnp.zeros((out_sub, f2p), jnp.float32)
    w3t = w3t.at[:action_dim, :h2].set(params["aw3"].T)
    w3t = w3t.at[action_dim:action_dim + 1, h2:f2].set(params["cw3"].T)
    b3 = jnp.zeros((out_sub, 1), jnp.float32)
    b3 = b3.at[:action_dim].set(params["ab3"].T)
    b3 = b3.at[action_dim:action_dim + 1].set(params["cb3"].T)

    return dict(
        w1=w1t.astype(compute_dtype), b1=b1,       # biases stay f32
        w2=w2t.astype(compute_dtype), b2=b2,
        w3=w3t.astype(compute_dtype), b3=b3,
        action_dim=action_dim, out_sub=out_sub, f1=f1, f2=f2,
    )


# ----------------------------------------------------------------------------
# Wrapper: batch grid, resident weights, lane-dense (transposed) output.
# ----------------------------------------------------------------------------
@functools.partial(jax.jit,
                   static_argnames=("action_dim", "out_sub", "f1", "f2"))
def _forward_impl(obs, w1, b1, w2, b2, w3, b3, *, action_dim, out_sub, f1, f2):
    B, obs_dim = obs.shape

    # Batch tile: multiple of 128 (batch is the lane axis of the output), at
    # least 2 tiles once B > 128 (v7x megacore), capped at 2048 to amortize
    # per-grid-step overhead while keeping VMEM tiny on all generations.
    n_tiles = max(2 if B > 128 else 1, pl.cdiv(B, 2048))
    tb = _round_up(pl.cdiv(B, n_tiles), 128)
    pb = tb * n_tiles

    # Layout plumbing in the wrapper: bf16 cast + transpose so the kernel sees
    # [obs_dim, batch] with batch on lanes; padded columns are sliced off below.
    obs_t = obs.astype(w1.dtype).T                               # [D, B]
    if pb != B:
        obs_t = jnp.pad(obs_t, ((0, 0), (0, pb - B)))

    weight_args = (w1, b1, w2, b2, w3, b3)
    # Constant index_map -> blocks are not re-DMA'd across grid steps
    # (weights stay VMEM-resident).
    weight_specs = [pl.BlockSpec(a.shape, lambda i: (0, 0)) for a in weight_args]
    in_specs = [pl.BlockSpec((obs_dim, tb), lambda i: (0, i))] + weight_specs
    out_spec = pl.BlockSpec((out_sub, tb), lambda i: (0, i))

    # Scheduler hint with logical (un-padded) widths and the true batch.
    flops = 2 * B * (obs_dim * f1 + f1 * f2 + f2 * (action_dim + 1))
    transcendentals = B * (f1 + f2)
    bytes_accessed = (obs.size * w1.dtype.itemsize
                      + B * (action_dim + 1) * 4
                      + sum(int(a.size) * a.dtype.itemsize for a in weight_args))

    out_t = pl.pallas_call(
        _actor_critic_kernel,
        out_shape=jax.ShapeDtypeStruct((out_sub, pb), jnp.float32),
        grid=(n_tiles,),
        in_specs=in_specs,
        out_specs=out_spec,
        compiler_params=pltpu.CompilerParams(
            dimension_semantics=("parallel",)),
        cost_estimate=pl.CostEstimate(
            flops=flops, transcendentals=transcendentals,
            bytes_accessed=bytes_accessed),
    )(obs_t, *weight_args)

    act_mean = out_t[:action_dim, :B].T                          # [B, A]
    value = out_t[action_dim:action_dim + 1, :B].T               # [B, 1]
    return act_mean, value


def actor_critic_forward(obs, packed):
    """forward(obs) -> (action_mean [B, action_dim], value [B, 1])."""
    return _forward_impl(
        obs, packed["w1"], packed["b1"], packed["w2"], packed["b2"],
        packed["w3"], packed["b3"],
        action_dim=int(packed["action_dim"]), out_sub=int(packed["out_sub"]),
        f1=int(packed["f1"]), f2=int(packed["f2"]))


# ----------------------------------------------------------------------------
# Params init + pure-JAX reference (exact f32).
# ----------------------------------------------------------------------------
def init_params(key, obs_dim, hidden_sizes, action_dim):
    """Deterministic synthetic init (PyTorch-like uniform fan-in scaling)."""
    h1, h2 = hidden_sizes

    def linear(key, fan_in, fan_out):
        kw, kb = jax.random.split(key)
        bound = 1.0 / jnp.sqrt(float(fan_in))
        w = jax.random.uniform(kw, (fan_in, fan_out), jnp.float32, -bound, bound)
        b = jax.random.uniform(kb, (1, fan_out), jnp.float32, -bound, bound)
        return w, b

    keys = jax.random.split(key, 6)
    aw1, ab1 = linear(keys[0], obs_dim, h1)
    aw2, ab2 = linear(keys[1], h1, h2)
    aw3, ab3 = linear(keys[2], h2, action_dim)
    cw1, cb1 = linear(keys[3], obs_dim, h1)
    cw2, cb2 = linear(keys[4], h1, h2)
    cw3, cb3 = linear(keys[5], h2, 1)
    return dict(
        aw1=aw1, ab1=ab1, aw2=aw2, ab2=ab2, aw3=aw3, ab3=ab3,
        cw1=cw1, cb1=cb1, cw2=cw2, cb2=cb2, cw3=cw3, cb3=cb3,
    )


def _reference_forward(obs, p):
    h = jnp.tanh(obs @ p["aw1"] + p["ab1"])
    h = jnp.tanh(h @ p["aw2"] + p["ab2"])
    act = h @ p["aw3"] + p["ab3"]
    g = jnp.tanh(obs @ p["cw1"] + p["cb1"])
    g = jnp.tanh(g @ p["cw2"] + p["cb2"])
    val = g @ p["cw3"] + p["cb3"]
    return act, val


if __name__ == "__main__":
    key = jax.random.PRNGKey(0)
    k_obs, k_par = jax.random.split(key)

    B, obs_dim, hidden_sizes, action_dim = 8, 16, (32, 32), 4

    obs = jax.random.normal(k_obs, (B, obs_dim), jnp.float32)
    params = init_params(k_par, obs_dim, hidden_sizes, action_dim)
    packed = pack_params(params)

    act_mean, value = actor_critic_forward(obs, packed)
    jax.block_until_ready((act_mean, value))

    ref_act, ref_val = _reference_forward(obs, params)
    assert act_mean.shape == (B, action_dim)
    assert value.shape == (B, 1)
    # Tolerance relaxed vs the f32 version because matmul operands are bf16
    # (f32 accumulation); observed error is ~1e-2 absolute at these scales.
    assert jnp.allclose(act_mean, ref_act, atol=5e-2, rtol=5e-2)
    assert jnp.allclose(value, ref_val, atol=5e-2, rtol=5e-2)

    # Also exercise the non-tile-aligned / multi-tile path (padding + grid=2).
    B2 = 300
    obs2 = jax.random.normal(jax.random.PRNGKey(1), (B2, obs_dim), jnp.float32)
    a2, v2 = actor_critic_forward(obs2, packed)
    jax.block_until_ready((a2, v2))
    ra2, rv2 = _reference_forward(obs2, params)
    assert a2.shape == (B2, action_dim) and v2.shape == (B2, 1)
    assert jnp.allclose(a2, ra2, atol=5e-2, rtol=5e-2)
    assert jnp.allclose(v2, rv2, atol=5e-2, rtol=5e-2)

    # TODO(synk): action_log_probs / act (Gaussian sampling + log-prob) are
    # distribution utilities, kept out of the kernel hot path.
    print("KERNEL_OK")
</pallas_src>

<mosaic_0001>
module attributes {stable_mosaic.version = 11 : i64} {
  func.func @_actor_critic_kernel(%arg0: i32, %arg1: memref<16x128xbf16, #tpu.memory_space<vmem>>, %arg2: memref<128x16xbf16, #tpu.memory_space<vmem>>, %arg3: memref<128x1xf32, #tpu.memory_space<vmem>>, %arg4: memref<128x128xbf16, #tpu.memory_space<vmem>>, %arg5: memref<128x1xf32, #tpu.memory_space<vmem>>, %arg6: memref<8x128xbf16, #tpu.memory_space<vmem>>, %arg7: memref<8x1xf32, #tpu.memory_space<vmem>>, %arg8: memref<8x128xf32, #tpu.memory_space<vmem>>) attributes {dimension_semantics = [#tpu.dimension_semantics<parallel>], iteration_bounds = array<i64: 1>, scalar_prefetch = 0 : i64, scratch_operands = 0 : i64, tpu.core_type = #tpu.core_type<tc>, window_params = [{transform_indices = @transform_0, window_bounds = array<i64: 16, 128>}, {pipeline_mode = #tpu.pipeline_mode<synchronous>, transform_indices = @transform_1, window_bounds = array<i64: 128, 16>}, {pipeline_mode = #tpu.pipeline_mode<synchronous>, transform_indices = @transform_2, window_bounds = array<i64: 128, 1>}, {pipeline_mode = #tpu.pipeline_mode<synchronous>, transform_indices = @transform_3, window_bounds = array<i64: 128, 128>}, {pipeline_mode = #tpu.pipeline_mode<synchronous>, transform_indices = @transform_4, window_bounds = array<i64: 128, 1>}, {pipeline_mode = #tpu.pipeline_mode<synchronous>, transform_indices = @transform_5, window_bounds = array<i64: 8, 128>}, {pipeline_mode = #tpu.pipeline_mode<synchronous>, transform_indices = @transform_6, window_bounds = array<i64: 8, 1>}, {transform_indices = @transform_7, window_bounds = array<i64: 8, 128>}]} {
    %c0 = arith.constant 0 : index
    %c0_0 = arith.constant 0 : index
    %0 = vector.load %arg1[%c0, %c0_0] : memref<16x128xbf16, #tpu.memory_space<vmem>>, vector<16x128xbf16>
    %c0_1 = arith.constant 0 : index
    %c0_2 = arith.constant 0 : index
    %1 = vector.load %arg2[%c0_1, %c0_2] : memref<128x16xbf16, #tpu.memory_space<vmem>>, vector<128x16xbf16>
    %cst = arith.constant dense<0.000000e+00> : vector<128x128xf32>
    %2 = tpu.matmul %1, %0, %cst {dimension_numbers = #tpu.dot_dimension_numbers<[1], [0], [0], [1], [0, 0, 1, 1], [], []>} : vector<128x16xbf16>, vector<16x128xbf16>, vector<128x128xf32> -> vector<128x128xf32>
    %c0_3 = arith.constant 0 : index
    %c0_4 = arith.constant 0 : index
    %3 = vector.load %arg3[%c0_3, %c0_4] : memref<128x1xf32, #tpu.memory_space<vmem>>, vector<128x1xf32>
    %4 = vector.broadcast %3 : vector<128x1xf32> to vector<128x128xf32>
    %5 = arith.addf %2, %4 : vector<128x128xf32>
    %6 = math.tanh %5 : vector<128x128xf32>
    %c0_5 = arith.constant 0 : index
    %c0_6 = arith.constant 0 : index
    %7 = vector.load %arg4[%c0_5, %c0_6] : memref<128x128xbf16, #tpu.memory_space<vmem>>, vector<128x128xbf16>
    %8 = arith.truncf %6 : vector<128x128xf32> to vector<128x128xbf16>
    %cst_7 = arith.constant dense<0.000000e+00> : vector<128x128xf32>
    %9 = tpu.matmul %7, %8, %cst_7 {dimension_numbers = #tpu.dot_dimension_numbers<[1], [0], [0], [1], [0, 0, 1, 1], [], []>} : vector<128x128xbf16>, vector<128x128xbf16>, vector<128x128xf32> -> vector<128x128xf32>
    %c0_8 = arith.constant 0 : index
    %c0_9 = arith.constant 0 : index
    %10 = vector.load %arg5[%c0_8, %c0_9] : memref<128x1xf32, #tpu.memory_space<vmem>>, vector<128x1xf32>
    %11 = vector.broadcast %10 : vector<128x1xf32> to vector<128x128xf32>
    %12 = arith.addf %9, %11 : vector<128x128xf32>
    %13 = math.tanh %12 : vector<128x128xf32>
    %c0_10 = arith.constant 0 : index
    %c0_11 = arith.constant 0 : index
    %14 = vector.load %arg6[%c0_10, %c0_11] : memref<8x128xbf16, #tpu.memory_space<vmem>>, vector<8x128xbf16>
    %15 = arith.truncf %13 : vector<128x128xf32> to vector<128x128xbf16>
    %cst_12 = arith.constant dense<0.000000e+00> : vector<8x128xf32>
    %16 = tpu.matmul %14, %15, %cst_12 {dimension_numbers = #tpu.dot_dimension_numbers<[1], [0], [0], [1], [0, 0, 1, 1], [], []>} : vector<8x128xbf16>, vector<128x128xbf16>, vector<8x128xf32> -> vector<8x128xf32>
    %c0_13 = arith.constant 0 : index
    %c0_14 = arith.constant 0 : index
    %17 = vector.load %arg7[%c0_13, %c0_14] : memref<8x1xf32, #tpu.memory_space<vmem>>, vector<8x1xf32>
    %18 = vector.broadcast %17 : vector<8x1xf32> to vector<8x128xf32>
    %19 = arith.addf %16, %18 : vector<8x128xf32>
    %c0_15 = arith.constant 0 : index
    %c0_16 = arith.constant 0 : index
    %20 = vector.load %arg8[%c0_15, %c0_16] : memref<8x128xf32, #tpu.memory_space<vmem>>, vector<8x128xf32>
    tpu.vector_store %arg8[%c0_15, %c0_16], %19 {strides = array<i32>} : memref<8x128xf32, #tpu.memory_space<vmem>>, vector<8x128xf32>,
    return
  }
  func.func @transform_0(%arg0: i32) -> (i32, i32) {
    %c0_i32 = arith.constant 0 : i32
    %c0_i32_0 = arith.constant 0 : i32
    return %c0_i32, %arg0 : i32, i32
  }
  func.func @transform_1(%arg0: i32) -> (i32, i32) {
    %c0_i32 = arith.constant 0 : i32
    %c0_i32_0 = arith.constant 0 : i32
    %c0_i32_1 = arith.constant 0 : i32
    return %c0_i32, %c0_i32_0 : i32, i32
  }
  func.func @transform_2(%arg0: i32) -> (i32, i32) {
    %c0_i32 = arith.constant 0 : i32
    %c0_i32_0 = arith.constant 0 : i32
    %c0_i32_1 = arith.constant 0 : i32
    return %c0_i32, %c0_i32_0 : i32, i32
  }
  func.func @transform_3(%arg0: i32) -> (i32, i32) {
    %c0_i32 = arith.constant 0 : i32
    %c0_i32_0 = arith.constant 0 : i32
    %c0_i32_1 = arith.constant 0 : i32
    return %c0_i32, %c0_i32_0 : i32, i32
  }
  func.func @transform_4(%arg0: i32) -> (i32, i32) {
    %c0_i32 = arith.constant 0 : i32
    %c0_i32_0 = arith.constant 0 : i32
    %c0_i32_1 = arith.constant 0 : i32
    return %c0_i32, %c0_i32_0 : i32, i32
  }
  func.func @transform_5(%arg0: i32) -> (i32, i32) {
    %c0_i32 = arith.constant 0 : i32
    %c0_i32_0 = arith.constant 0 : i32
    %c0_i32_1 = arith.constant 0 : i32
    return %c0_i32, %c0_i32_0 : i32, i32
  }
  func.func @transform_6(%arg0: i32) -> (i32, i32) {
    %c0_i32 = arith.constant 0 : i32
    %c0_i32_0 = arith.constant 0 : i32
    %c0_i32_1 = arith.constant 0 : i32
    return %c0_i32, %c0_i32_0 : i32, i32
  }
  func.func @transform_7(%arg0: i32) -> (i32, i32) {
    %c0_i32 = arith.constant 0 : i32
    %c0_i32_0 = arith.constant 0 : i32
    return %c0_i32, %arg0 : i32, i32
  }
}

</mosaic_0001>

<bundles_post_ra>
// kernel: _forward_impl.1
= control target key start
LH: loop header
LB: loop body
LE: loop exit
PB: predicated region body
PF: predicated region fallthrough
CT: control target
= control target key end

     0   :  { %vm187_vm0 = vcmask 130048   ;;  %v881_v1 = vmov 0   ;;  %vm883_vm1 = vmmov 0   ;;  %s1097_s0 = inlined_call_operand.vmem [shape: bf16[16,128], index: 0, kind: input, shape index: {}]   ;;  %s1098_s1 = inlined_call_operand.vmem [shape: bf16[128,16], index: 1, kind: input, shape index: {}]   ;;  %s1099_s2 = inlined_call_operand.vmem [shape: f32[128,1], index: 2, kind: input, shape index: {}]   ;;  %s1100_s4 = inlined_call_operand.vmem [shape: f32[128,1], index: 4, kind: input, shape index: {}]   ;;  %s1101_s6 = inlined_call_operand.vmem [shape: f32[8,1], index: 6, kind: input, shape index: {}]   ;;  %s1102_s3 = inlined_call_operand.vmem [shape: bf16[128,128], index: 3, kind: input, shape index: {}]   ;;  %s1103_s5 = inlined_call_operand.vmem [shape: bf16[8,128], index: 5, kind: input, shape index: {}]   ;;  %s1104_s7 = inlined_call_operand.vmem [shape: f32[8,128], index: 7, kind: output, shape index: {}]  }
   0x1   :  { %v800_v0 = vld [vmem:[%s1097_s0] sm:$0xff]   ;;  %798 = vset.pattern.permute.xlu0 %v881_v1  ;;  %799 = vset.pattern.permute.xlu1 %v881_v1  ;;  %v802_v3 = vld [vmem:[%s1098_s1 + $0x8] sm:$0xff]   ;;  %v803_v4 = vld [vmem:[%s1098_s1 + $0x10] sm:$0xff]  }
   0x2   :  { %v801_v2 = vld [vmem:[%s1098_s1] sm:$0xff]   ;;  %725 = vmatprep.subr.bf16.mxu0 %v800_v0  ;;  %v46_v6 = vld [vmem:[%s1099_s2 + $0x8] sm:$0xff]  ;;  %v47_v7 = vld [vmem:[%s1099_s2 + $0x10] sm:$0xff] }
   0x3   :  { %726 = vmatpush3.bf16.msra.mxu0 %v800_v0  ;;  %727 = vmatprep.mubr.msk.bf16.mxu0 %vm187_vm0, %v801_v2  ;;  %v45_v5 = vld [vmem:[%s1099_s2] sm:$0xff]  ;;  %v804_v8 = vld [vmem:[%s1098_s1 + $0x18] sm:$0xff]   ;;  %v50_v12 = vld [vmem:[%s1099_s2 + $0x28] sm:$0xff] }
   0x4   :  { %63 = vperm.xlu0 %798, %v45_v5   ;;  %73 = vperm.xlu1 %799, %v47_v7   ;;  %v805_v9 = vld [vmem:[%s1098_s1 + $0x20] sm:$0xff]   ;;  %v48_v10 = vld [vmem:[%s1099_s2 + $0x18] sm:$0xff]  ;;  %v51_v13 = vld [vmem:[%s1099_s2 + $0x30] sm:$0xff] }
   0x5   :  { %v49_v11 = vld [vmem:[%s1099_s2 + $0x20] sm:$0xff]  ;;  %v806_v14 = vld [vmem:[%s1098_s1 + $0x28] sm:$0xff]   ;;  %v807_v15 = vld [vmem:[%s1098_s1 + $0x30] sm:$0xff]  }
   0x6   :  { %728 = vmatmul.mubr.msk.bf16.vlgmr.msra.gmra.mrb[0].mxu0 %vm187_vm0, %v802_v3  ;;  %v52_v16 = vld [vmem:[%s1099_s2 + $0x38] sm:$0xff]  ;;  %v53_v17 = vld [vmem:[%s1099_s2 + $0x40] sm:$0xff]  ;;  %v54_v18 = vld [vmem:[%s1099_s2 + $0x48] sm:$0xff] }
   0x7   :  { %731 = vmatprep.mubr.msk.bf16.mxu0 %vm187_vm0, %v803_v4  ;;  %v55_v19 = vld [vmem:[%s1099_s2 + $0x50] sm:$0xff]  ;;  %v808_v20 = vld [vmem:[%s1098_s1 + $0x38] sm:$0xff]   ;;  %v57_v22 = vld [vmem:[%s1099_s2 + $0x60] sm:$0xff] }
   0x8   :  { %68 = vperm.xlu0 %798, %v46_v6   ;;  %78 = vperm.xlu1 %799, %v48_v10   ;;  %v56_v21 = vld [vmem:[%s1099_s2 + $0x58] sm:$0xff]  ;;  %v58_v23 = vld [vmem:[%s1099_s2 + $0x68] sm:$0xff]  ;;  %v59_v24 = vld [vmem:[%s1099_s2 + $0x70] sm:$0xff] }
   0x9   :  { %v60_v25 = vld [vmem:[%s1099_s2 + $0x78] sm:$0xff]  ;;  %v349_v26 = vld [vmem:[%s1100_s4] sm:$0xff]  ;;  %v350_v27 = vld [vmem:[%s1100_s4 + $0x8] sm:$0xff] }
   0xa   :  { %v351_v28 = vld [vmem:[%s1100_s4 + $0x10] sm:$0xff]  ;;  %v352_v29 = vld [vmem:[%s1100_s4 + $0x18] sm:$0xff]  ;;  %v353_v30 = vld [vmem:[%s1100_s4 + $0x20] sm:$0xff] }
   0xb   :  { %v354_v31 = vld [vmem:[%s1100_s4 + $0x28] sm:$0xff]  ;;  %v355_v32 = vld [vmem:[%s1100_s4 + $0x30] sm:$0xff]  ;;  %v356_v33 = vld [vmem:[%s1100_s4 + $0x38] sm:$0xff] }
   0xc   :  { %83 = vperm.xlu0 %798, %v49_v11   ;;  %88 = vperm.xlu1 %799, %v50_v12   ;;  %v357_v34 = vld [vmem:[%s1100_s4 + $0x40] sm:$0xff]  ;;  %v358_v35 = vld [vmem:[%s1100_s4 + $0x48] sm:$0xff]  ;;  %v359_v36 = vld [vmem:[%s1100_s4 + $0x50] sm:$0xff] }
   0xd   :  { %v360_v37 = vld [vmem:[%s1100_s4 + $0x58] sm:$0xff]  ;;  %v361_v38 = vld [vmem:[%s1100_s4 + $0x60] sm:$0xff]  ;;  %v362_v39 = vld [vmem:[%s1100_s4 + $0x68] sm:$0xff] }
   0xe   :  { %732 = vmatmul.mubr.msk.bf16.gmra.mrb[4].mxu0 %vm187_vm0, %v804_v8  ;;  %v363_v40 = vld [vmem:[%s1100_s4 + $0x70] sm:$0xff]  ;;  %v364_v41 = vld [vmem:[%s1100_s4 + $0x78] sm:$0xff]  ;;  %v615_v42 = vld [vmem:[%s1101_s6] sm:$0xff] }
   0xf   :  { %735 = vmatprep.mubr.msk.bf16.mxu0 %vm187_vm0, %v805_v9  ;;  %v809_v43 = vld [vmem:[%s1102_s3] sm:$0xff]  }
  0x10   :  { %93 = vperm.xlu0 %798, %v51_v13   ;;  %98 = vperm.xlu1 %799, %v52_v16  }
  0x11   :  { %759 = vmatprep.mubr.bf16.mxu1 %v809_v43 }
  0x14   :  { %103 = vperm.xlu0 %798, %v53_v17   ;;  %108 = vperm.xlu1 %799, %v54_v18  }
  0x16   :  { %736 = vmatmul.mubr.msk.bf16.gmra.mrb[8].mxu0 %vm187_vm0, %v806_v14 }
  0x17   :  { %739 = vmatprep.mubr.msk.bf16.mxu0 %vm187_vm0, %v807_v15 }
  0x18   :  { %113 = vperm.xlu0 %798, %v55_v19   ;;  %118 = vperm.xlu1 %799, %v56_v21  }
  0x1c   :  { %123 = vperm.xlu0 %798, %v57_v22   ;;  %128 = vperm.xlu1 %799, %v58_v23  }
  0x1e   :  { %740 = vmatmul.mubr.msk.bf16.gmra.mrb[12].mxu0 %vm187_vm0, %v808_v20 }
  0x20   :  { %133 = vperm.xlu0 %798, %v59_v24   ;;  %138 = vperm.xlu1 %799, %v60_v25  }
  0x24   :  { %367 = vperm.xlu0 %798, %v349_v26   ;;  %372 = vperm.xlu1 %799, %v350_v27  }
  0x28   :  { %377 = vperm.xlu0 %798, %v351_v28   ;;  %382 = vperm.xlu1 %799, %v352_v29  }
  0x2c   :  { %387 = vperm.xlu0 %798, %v353_v30   ;;  %392 = vperm.xlu1 %799, %v354_v31  }
  0x30   :  { %397 = vperm.xlu0 %798, %v355_v32   ;;  %402 = vperm.xlu1 %799, %v356_v33  }
  0x34   :  { %407 = vperm.xlu0 %798, %v357_v34   ;;  %412 = vperm.xlu1 %799, %v358_v35  }
  0x38   :  { %417 = vperm.xlu0 %798, %v359_v36   ;;  %422 = vperm.xlu1 %799, %v360_v37  }
  0x3c   :  { %427 = vperm.xlu0 %798, %v361_v38   ;;  %432 = vperm.xlu1 %799, %v362_v39  }
  0x40   :  { %437 = vperm.xlu0 %798, %v363_v40   ;;  %442 = vperm.xlu1 %799, %v364_v41  }
  0x44   :  { %618 = vperm.xlu0 %798, %v615_v42  }
  0x83   :  { %v64_v44 = vpop.permute.xlu0 %63  ;;  %v74_v45 = vpop.permute.xlu1 %73 }
  0x87   :  { %v69_v46 = vpop.permute.xlu0 %68  ;;  %v79_v47 = vpop.permute.xlu1 %78 }
  0x8b   :  { %v84_v48 = vpop.permute.xlu0 %83  ;;  %v89_v49 = vpop.permute.xlu1 %88 }
  0x8f   :  { %v94_v50 = vpop.permute.xlu0 %93  ;;  %v99_v54 = vpop.permute.xlu1 %98 }
  0x93   :  { %v104_v60 = vpop.permute.xlu0 %103  ;;  %v109_v61 = vpop.permute.xlu1 %108 }
  0x97   :  { %v114_v5 = vpop.permute.xlu0 %113  ;;  %v119_v9 = vpop.permute.xlu1 %118 }
  0x9b   :  { %v124_v17 = vpop.permute.xlu0 %123  ;;  %v129_v22 = vpop.permute.xlu1 %128 }
  0x9f   :  { %v134_v28 = vpop.permute.xlu0 %133  ;;  %v139_v34 = vpop.permute.xlu1 %138 }
  0xd9   :  { %v729_v51 = vpop.f32.mrb[0].mxu0 }
  0xda   :  { %v255_v52 = vadd.f32 %v729_v51, %v74_v45  ;;  %v246_v53 = vpop.f32.mrb[1].mxu0 }
  0xdb   :  { %v247_v55 = vadd.f32 %v246_v53, %v64_v44  ;;  %v730_v56 = vpop.f32.mrb[2].mxu0  ;;  %v811_v53 = vld [vmem:[%s1102_s3 + $0x10] sm:$0xff]  }
  0xdc   :  { %817 = vtanh.f32 %v255_v52  ;;  %v258_v57 = vadd.f32 %v730_v56, %v79_v47  ;;  %v249_v58 = vpop.f32.mrb[3].mxu0  ;;  %v810_v52 = vld [vmem:[%s1102_s3 + $0x8] sm:$0xff]  }
  0xdd   :  { %819 = vtanh.f32 %v247_v55  ;;  %v250_v59 = vadd.f32 %v249_v58, %v69_v46  ;;  %v813_v55 = vld [vmem:[%s1102_s3 + $0x20] sm:$0xff]   ;;  %v814_v56 = vld [vmem:[%s1102_s3 + $0x28] sm:$0xff]   ;;  %v816_v58 = vld [vmem:[%s1102_s3 + $0x38] sm:$0xff]  }
  0xde   :  { %821 = vtanh.f32 %v258_v57  ;;  %v815_v57 = vld [vmem:[%s1102_s3 + $0x30] sm:$0xff]  }
  0xdf   :  { %823 = vtanh.f32 %v250_v59  ;;  %v882_v59 = vmov 0.0  }
  0xe0   :  { %775 = vmatprep.subr.bf16.mxu0 %v882_v59  ;;  %791 = vmatprep.mubr.msk.bf16.mxu0 %vm883_vm1, %v882_v59 }
  0xe1   :  { %v733_v62 = vpop.f32.mrb[4].mxu0 }
  0xe2   :  { %v271_v63 = vadd.f32 %v733_v62, %v94_v50  ;;  %v262_v0 = vpop.f32.mrb[5].mxu0 }
  0xe3   :  { %v263_v1 = vadd.f32 %v262_v0, %v84_v48  ;;  %v734_v2 = vpop.f32.mrb[6].mxu0 }
  0xe4   :  { %825 = vtanh.f32 %v271_v63  ;;  %v274_v3 = vadd.f32 %v734_v2, %v99_v54  ;;  %v265_v4 = vpop.f32.mrb[7].mxu0  ;;  %v812_v54 = vld [vmem:[%s1102_s3 + $0x18] sm:$0xff]  }
  0xe5   :  { %827 = vtanh.f32 %v263_v1  ;;  %v266_v6 = vadd.f32 %v265_v4, %v89_v49 }
  0xe6   :  { %v818_v7 = vpop.eup %817  ;;  %829 = vtanh.f32 %v274_v3 }
  0xe7   :  { %v820_v8 = vpop.eup %819  ;;  %831 = vtanh.f32 %v266_v6 }
  0xe8   :  { %v822_v10 = vpop.eup %821 }
  0xe9   :  { %v824_v11 = vpop.eup %823  ;;  %v737_v12 = vpop.f32.mrb[8].mxu0  ;;  %v342_v13 = vpack.c.bf16 %v822_v10, %v818_v7 }
  0xea   :  { %v287_v14 = vadd.f32 %v737_v12, %v114_v5  ;;  %v278_v15 = vpop.f32.mrb[9].mxu0  ;;  %v341_v16 = vpack.c.bf16 %v824_v11, %v820_v8 }
  0xeb   :  { %v279_v18 = vadd.f32 %v278_v15, %v104_v60  ;;  %v738_v19 = vpop.f32.mrb[10].mxu0  ;;  %v368_v60 = vpop.permute.xlu0 %367 }
  0xec   :  { %833 = vtanh.f32 %v287_v14  ;;  %v290_v20 = vadd.f32 %v738_v19, %v119_v9  ;;  %v281_v21 = vpop.f32.mrb[11].mxu0  ;;  %743 = vmatprep.subr.bf16.mxu1 %v341_v16 }
  0xed   :  { %835 = vtanh.f32 %v279_v18  ;;  %v282_v23 = vadd.f32 %v281_v21, %v109_v61  ;;  %744 = vmatpush3.bf16.msra.mxu1 %v341_v16  ;;  %v373_v61 = vpop.permute.xlu1 %372 }
  0xee   :  { %v826_v24 = vpop.eup %825  ;;  %837 = vtanh.f32 %v290_v20  ;;  %745 = vmatprep.subr.bf16.mxu1 %v342_v13 }
  0xef   :  { %v828_v25 = vpop.eup %827  ;;  %839 = vtanh.f32 %v282_v23  ;;  %v378_v62 = vpop.permute.xlu0 %377 }
  0xf0   :  { %v830_v26 = vpop.eup %829 }
  0xf1   :  { %v832_v27 = vpop.eup %831  ;;  %v741_v29 = vpop.f32.mrb[12].mxu0  ;;  %746 = vmatpush3.bf16.msra.mxu1 %v342_v13  ;;  %v344_v30 = vpack.c.bf16 %v830_v26, %v826_v24 }
  0xf2   :  { %v303_v31 = vadd.f32 %v741_v29, %v134_v28  ;;  %v294_v32 = vpop.f32.mrb[13].mxu0  ;;  %v343_v33 = vpack.c.bf16 %v832_v27, %v828_v25  ;;  %v383_v63 = vpop.permute.xlu1 %382 }
  0xf3   :  { %v295_v35 = vadd.f32 %v294_v32, %v124_v17  ;;  %v742_v36 = vpop.f32.mrb[14].mxu0  ;;  %v388_v0 = vpop.permute.xlu0 %387 }
  0xf4   :  { %841 = vtanh.f32 %v303_v31  ;;  %v306_v37 = vadd.f32 %v742_v36, %v139_v34  ;;  %v297_v38 = vpop.f32.mrb[15].mxu0  ;;  %747 = vmatprep.subr.bf16.mxu1 %v343_v33 }
  0xf5   :  { %843 = vtanh.f32 %v295_v35  ;;  %v298_v39 = vadd.f32 %v297_v38, %v129_v22  ;;  %748 = vmatpush3.bf16.msra.mxu1 %v343_v33 }
  0xf6   :  { %v834_v40 = vpop.eup %833  ;;  %845 = vtanh.f32 %v306_v37  ;;  %749 = vmatprep.subr.bf16.mxu1 %v344_v30  ;;  %v393_v1 = vpop.permute.xlu1 %392 }
  0xf7   :  { %v836_v41 = vpop.eup %835  ;;  %847 = vtanh.f32 %v298_v39  ;;  %v398_v2 = vpop.permute.xlu0 %397 }
  0xf8   :  { %v838_v42 = vpop.eup %837 }
  0xf9   :  { %v840_v43 = vpop.eup %839  ;;  %750 = vmatpush3.bf16.msra.mxu1 %v344_v30  ;;  %v346_v44 = vpack.c.bf16 %v838_v42, %v834_v40 }
  0xfa   :  { %v345_v45 = vpack.c.bf16 %v840_v43, %v836_v41  ;;  %v403_v6 = vpop.permute.xlu1 %402 }
  0xfb   :  { %v408_v12 = vpop.permute.xlu0 %407 }
  0xfc   :  { %751 = vmatprep.subr.bf16.mxu1 %v345_v45 }
  0xfd   :  { %752 = vmatpush3.bf16.msra.mxu1 %v345_v45 }
  0xfe   :  { %v842_v46 = vpop.eup %841  ;;  %753 = vmatprep.subr.bf16.mxu1 %v346_v44  ;;  %v413_v13 = vpop.permute.xlu1 %412 }
  0xff   :  { %v844_v47 = vpop.eup %843  ;;  %v418_v21 = vpop.permute.xlu0 %417 }
 0x100   :  { %v846_v48 = vpop.eup %845 }
 0x101   :  { %v848_v49 = vpop.eup %847  ;;  %754 = vmatpush3.bf16.msra.mxu1 %v346_v44  ;;  %v348_v50 = vpack.c.bf16 %v846_v48, %v842_v46 }
 0x102   :  { %v347_v51 = vpack.c.bf16 %v848_v49, %v844_v47  ;;  %v423_v25 = vpop.permute.xlu1 %422 }
 0x103   :  { %v428_v33 = vpop.permute.xlu0 %427 }
 0x104   :  { %755 = vmatprep.subr.bf16.mxu1 %v347_v51 }
 0x105   :  { %756 = vmatpush3.bf16.msra.mxu1 %v347_v51 }
 0x106   :  { %757 = vmatprep.subr.bf16.mxu1 %v348_v50  ;;  %v433_v38 = vpop.permute.xlu1 %432 }
 0x107   :  { %v438_v44 = vpop.permute.xlu0 %437 }
 0x109   :  { %758 = vmatpush3.bf16.msra.mxu1 %v348_v50 }
 0x10a   :  { %v443_v50 = vpop.permute.xlu1 %442 }
 0x10c   :  { %760 = vmatmul.mubr.bf16.vlgmr.msra.gmra.mrb[0].mxu1 %v810_v52 }
 0x10d   :  { %763 = vmatprep.mubr.bf16.mxu1 %v811_v53 }
 0x114   :  { %764 = vmatmul.mubr.bf16.gmra.mrb[4].mxu1 %v812_v54 }
 0x115   :  { %767 = vmatprep.mubr.bf16.mxu1 %v813_v55 }
 0x11c   :  { %768 = vmatmul.mubr.bf16.gmra.mrb[8].mxu1 %v814_v56 }
 0x11d   :  { %771 = vmatprep.mubr.bf16.mxu1 %v815_v57 }
 0x124   :  { %772 = vmatmul.mubr.bf16.gmra.mrb[12].mxu1 %v816_v58 }
 0x1df   :  { %v761_v3 = vpop.f32.mrb[0].mxu1 }
 0x1e0   :  { %v536_v4 = vadd.f32 %v761_v3, %v378_v62  ;;  %v527_v5 = vpop.f32.mrb[1].mxu1 }
 0x1e1   :  { %v528_v7 = vadd.f32 %v527_v5, %v368_v60  ;;  %v762_v8 = vpop.f32.mrb[2].mxu1  ;;  %v606_v5 = vld [vmem:[%s1103_s5] sm:$0xf] }
 0x1e2   :  { %849 = vtanh.f32 %v536_v4  ;;  %v539_v9 = vadd.f32 %v762_v8, %v383_v63  ;;  %v530_v10 = vpop.f32.mrb[3].mxu1 }
 0x1e3   :  { %851 = vtanh.f32 %v528_v7  ;;  %v531_v11 = vadd.f32 %v530_v10, %v373_v61 }
 0x1e4   :  { %853 = vtanh.f32 %v539_v9 }
 0x1e5   :  { %855 = vtanh.f32 %v531_v11 }
 0x1e7   :  { %v765_v14 = vpop.f32.mrb[4].mxu1 }
 0x1e8   :  { %v552_v15 = vadd.f32 %v765_v14, %v398_v2  ;;  %v543_v16 = vpop.f32.mrb[5].mxu1 }
 0x1e9   :  { %v544_v17 = vadd.f32 %v543_v16, %v388_v0  ;;  %v766_v18 = vpop.f32.mrb[6].mxu1 }
 0x1ea   :  { %857 = vtanh.f32 %v552_v15  ;;  %v555_v19 = vadd.f32 %v766_v18, %v403_v6  ;;  %v546_v20 = vpop.f32.mrb[7].mxu1  ;;  %v619_v6 = vpop.permute.xlu0 %618 }
 0x1eb   :  { %859 = vtanh.f32 %v544_v17  ;;  %v547_v22 = vadd.f32 %v546_v20, %v393_v1 }
 0x1ec   :  { %v850_v23 = vpop.eup %849  ;;  %861 = vtanh.f32 %v555_v19 }
 0x1ed   :  { %v852_v24 = vpop.eup %851  ;;  %863 = vtanh.f32 %v547_v22 }
 0x1ee   :  { %v854_v26 = vpop.eup %853 }
 0x1ef   :  { %v856_v27 = vpop.eup %855  ;;  %v769_v28 = vpop.f32.mrb[8].mxu1  ;;  %v608_v29 = vpack.c.bf16 %v854_v26, %v850_v23 }
 0x1f0   :  { %v568_v30 = vadd.f32 %v769_v28, %v418_v21  ;;  %v559_v31 = vpop.f32.mrb[9].mxu1  ;;  %v607_v32 = vpack.c.bf16 %v856_v27, %v852_v24 }
 0x1f1   :  { %v560_v34 = vadd.f32 %v559_v31, %v408_v12  ;;  %v770_v35 = vpop.f32.mrb[10].mxu1 }
 0x1f2   :  { %865 = vtanh.f32 %v568_v30  ;;  %v571_v36 = vadd.f32 %v770_v35, %v423_v25  ;;  %v562_v37 = vpop.f32.mrb[11].mxu1  ;;  %776 = vmatpush3.bf16.msra.mxu0 %v607_v32 }
 0x1f3   :  { %867 = vtanh.f32 %v560_v34  ;;  %v563_v39 = vadd.f32 %v562_v37, %v413_v13  ;;  %777 = vmatprep.subr.bf16.mxu0 %v882_v59 }
 0x1f4   :  { %v858_v40 = vpop.eup %857  ;;  %869 = vtanh.f32 %v571_v36 }
 0x1f5   :  { %v860_v41 = vpop.eup %859  ;;  %871 = vtanh.f32 %v563_v39 }
 0x1f6   :  { %v862_v42 = vpop.eup %861  ;;  %778 = vmatpush3.bf16.msra.mxu0 %v608_v29 }
 0x1f7   :  { %v864_v43 = vpop.eup %863  ;;  %v773_v45 = vpop.f32.mrb[12].mxu1  ;;  %779 = vmatprep.subr.bf16.mxu0 %v882_v59  ;;  %v610_v46 = vpack.c.bf16 %v862_v42, %v858_v40 }
 0x1f8   :  { %v584_v47 = vadd.f32 %v773_v45, %v438_v44  ;;  %v575_v48 = vpop.f32.mrb[13].mxu1  ;;  %v609_v49 = vpack.c.bf16 %v864_v43, %v860_v41 }
 0x1f9   :  { %v576_v51 = vadd.f32 %v575_v48, %v428_v33  ;;  %v774_v52 = vpop.f32.mrb[14].mxu1 }
 0x1fa   :  { %873 = vtanh.f32 %v584_v47  ;;  %v587_v53 = vadd.f32 %v774_v52, %v443_v50  ;;  %v578_v54 = vpop.f32.mrb[15].mxu1  ;;  %780 = vmatpush3.bf16.msra.mxu0 %v609_v49 }
 0x1fb   :  { %875 = vtanh.f32 %v576_v51  ;;  %v579_v55 = vadd.f32 %v578_v54, %v433_v38  ;;  %781 = vmatprep.subr.bf16.mxu0 %v882_v59 }
 0x1fc   :  { %v866_v56 = vpop.eup %865  ;;  %877 = vtanh.f32 %v587_v53 }
 0x1fd   :  { %v868_v57 = vpop.eup %867  ;;  %879 = vtanh.f32 %v579_v55 }
 0x1fe   :  { %v870_v58 = vpop.eup %869  ;;  %782 = vmatpush3.bf16.msra.mxu0 %v610_v46 }
 0x1ff   :  { %v872_v60 = vpop.eup %871  ;;  %783 = vmatprep.subr.bf16.mxu0 %v882_v59  ;;  %v612_v61 = vpack.c.bf16 %v870_v58, %v866_v56 }
 0x200   :  { %v611_v62 = vpack.c.bf16 %v872_v60, %v868_v57 }
 0x202   :  { %784 = vmatpush3.bf16.msra.mxu0 %v611_v62 }
 0x203   :  { %785 = vmatprep.subr.bf16.mxu0 %v882_v59 }
 0x204   :  { %v874_v63 = vpop.eup %873 }
 0x205   :  { %v876_v0 = vpop.eup %875 }
 0x206   :  { %v878_v1 = vpop.eup %877  ;;  %786 = vmatpush3.bf16.msra.mxu0 %v612_v61 }
 0x207   :  { %v880_v2 = vpop.eup %879  ;;  %787 = vmatprep.subr.bf16.mxu0 %v882_v59  ;;  %v614_v3 = vpack.c.bf16 %v878_v1, %v874_v63 }
 0x208   :  { %v613_v4 = vpack.c.bf16 %v880_v2, %v876_v0 }
 0x20a   :  { %788 = vmatpush3.bf16.msra.mxu0 %v613_v4 }
 0x20b   :  { %789 = vmatprep.subr.bf16.mxu0 %v882_v59 }
 0x20e   :  { %790 = vmatpush3.bf16.msra.mxu0 %v614_v3 }
 0x211   :  { %792 = vmatmul.mubr.bf16.vlgmr.msra.gmra.mrb[16].mxu0 %v606_v5 }
 0x2e4   :  { %v655_v7 = vpop.f32.mrb[16].mxu0 }
 0x2e5   :  { %v656_v8 = vadd.f32 %v655_v7, %v619_v6  ;;  %v793_v9 = vpop.f32.mrb[17].mxu0 }
 0x2e6   :  { %v658_v10 = vpop.f32.mrb[18].mxu0 }
 0x2e7   :  { %661 = vst [vmem:[%s1104_s7] sm:$0xff] %v656_v8  ;;  %v794_v11 = vpop.f32.mrb[19].mxu0 }

</bundles_post_ra>
